<compile_context>
chip_gen: v5e
topology: v5e:2x2
jax: 0.10.0
libtpu: 0.0.40
codegen_flags: <defaults>
</compile_context>

<pallas_src>
import jax
import jax.numpy as jnp
from jax.experimental import pallas as pl
from jax.experimental.pallas import tpu as pltpu


def _ffn_kernel(x_ref, w1_ref, b1_ref, w2_ref, b2_ref, o_ref, acc_ref):
    # x_ref : (TM, d_model)    mxu dtype (bf16)
    # w1_ref: (d_model, TFF)   mxu dtype    b1_ref: (1, TFF)      f32
    # w2_ref: (TFF, d_model)   mxu dtype    b2_ref: (1, d_model)  f32
    # o_ref : (TM, d_model)    out dtype    acc_ref: (TM, d_model) f32 scratch
    k = pl.program_id(1)

    @pl.when(k == 0)
    def _():
        acc_ref[...] = jnp.zeros_like(acc_ref)

    # linear_1 (one d_ff slice) on the MXU with f32 accumulation; bias + ReLU
    # stay in f32 on the VPU.
    h = jnp.dot(x_ref[...], w1_ref[...], preferred_element_type=jnp.float32)
    h = jnp.maximum(h + b1_ref[...], 0.0)
    # dropout == identity (inference).
    # Partial linear_2: accumulate this d_ff slice's contribution in f32.
    acc_ref[...] += jnp.dot(h.astype(w2_ref.dtype), w2_ref[...],
                            preferred_element_type=jnp.float32)

    @pl.when(k == pl.num_programs(1) - 1)
    def _():
        o_ref[...] = (acc_ref[...] + b2_ref[...]).astype(o_ref.dtype)


def _round_up(x, m):
    return ((x + m - 1) // m) * m


def _pick_tff(d_ff, max_tff=512):
    # Largest multiple of 128 (<= max_tff) that divides d_ff; else full d_ff
    # (full-extent blocks are always legal).
    for cand in range(max_tff, 0, -128):
        if d_ff % cand == 0:
            return cand
    return d_ff


def feed_forward(x, w1, b1, w2, b2, *, mxu_dtype=jnp.bfloat16,
                 tm_max=256, tff_max=512):
    """x: [..., d_model] -> [..., d_model]  (FeedForward forward, eval mode)."""
    orig_dtype = x.dtype
    d_model = x.shape[-1]
    d_ff = w1.shape[-1]
    lead = x.shape[:-1]
    M = 1
    for s in lead:
        M *= s

    # --- Tile sizes (fit v7x's 64 MiB VMEM as well as v5e/v6e's 128 MiB). ---
    TM = min(tm_max, _round_up(M, 8))
    M_pad = _round_up(M, TM)
    TFF = _pick_tff(d_ff, tff_max)
    n_m = M_pad // TM
    n_ff = d_ff // TFF

    # --- Layout / dtype plumbing (wrapper side, not in the kernel). ---
    x2 = x.reshape(M, d_model).astype(mxu_dtype)
    if M_pad != M:
        x2 = jnp.pad(x2, ((0, M_pad - M), (0, 0)))
    w1c = w1.astype(mxu_dtype)
    w2c = w2.astype(mxu_dtype)
    b1_2 = b1.reshape(1, d_ff).astype(jnp.float32)
    b2_2 = b2.reshape(1, d_model).astype(jnp.float32)

    # --- Cost estimate (two matmuls) + explicit VMEM budget. ---
    flops = 4 * M_pad * d_model * d_ff
    bytes_accessed = (x2.size * x2.dtype.itemsize
                      + w1c.size * w1c.dtype.itemsize
                      + w2c.size * w2c.dtype.itemsize
                      + b1_2.size * b1_2.dtype.itemsize
                      + b2_2.size * b2_2.dtype.itemsize
                      + M_pad * d_model * jnp.dtype(orig_dtype).itemsize)
    cost = pl.CostEstimate(flops=flops, transcendentals=0,
                           bytes_accessed=bytes_accessed)

    bm = jnp.dtype(mxu_dtype).itemsize
    bo = jnp.dtype(orig_dtype).itemsize
    vmem_est = (2 * TM * d_model * bm          # x tiles (double-buffered)
                + 2 * TM * d_model * bo        # out tiles
                + 2 * d_model * TFF * bm       # w1 tile
                + 2 * TFF * d_model * bm       # w2 tile
                + 2 * (TFF + d_model) * 4      # biases
                + TM * d_model * 4             # f32 accumulator scratch
                + TM * TFF * 4)                # f32 intermediate h
    vmem_limit = int(min(max(2 * vmem_est, 32 * 1024 * 1024),
                         56 * 1024 * 1024))

    grid_spec = pltpu.PrefetchScalarGridSpec(
        num_scalar_prefetch=0,
        grid=(n_m, n_ff),                      # reduction (d_ff) axis last
        in_specs=[
            pl.BlockSpec((TM, d_model), lambda i, k: (i, 0)),   # x tile
            pl.BlockSpec((d_model, TFF), lambda i, k: (0, k)),  # w1 (resident over i)
            pl.BlockSpec((1, TFF), lambda i, k: (0, k)),        # b1
            pl.BlockSpec((TFF, d_model), lambda i, k: (k, 0)),  # w2
            pl.BlockSpec((1, d_model), lambda i, k: (0, 0)),    # b2
        ],
        out_specs=pl.BlockSpec((TM, d_model), lambda i, k: (i, 0)),
        scratch_shapes=[pltpu.VMEM((TM, d_model), jnp.float32)],
    )

    out = pl.pallas_call(
        _ffn_kernel,
        out_shape=jax.ShapeDtypeStruct((M_pad, d_model), orig_dtype),
        grid_spec=grid_spec,
        compiler_params=pltpu.CompilerParams(
            dimension_semantics=("parallel", "arbitrary"),
            vmem_limit_bytes=vmem_limit),
        cost_estimate=cost,
    )(x2, w1c, b1_2, w2c, b2_2)

    if M_pad != M:
        out = out[:M]
    return out.reshape(*lead, d_model)


def init_params(key, d_model, d_ff):
    # Deterministic init mimicking nn.Linear (uniform(-1/sqrt(fan_in), +)).
    k1, k2, k3, k4 = jax.random.split(key, 4)
    bound1 = 1.0 / (d_model ** 0.5)
    bound2 = 1.0 / (d_ff ** 0.5)
    w1 = jax.random.uniform(k1, (d_model, d_ff), jnp.float32, -bound1, bound1)
    b1 = jax.random.uniform(k2, (d_ff,), jnp.float32, -bound1, bound1)
    w2 = jax.random.uniform(k3, (d_ff, d_model), jnp.float32, -bound2, bound2)
    b2 = jax.random.uniform(k4, (d_model,), jnp.float32, -bound2, bound2)
    return w1, b1, w2, b2


if __name__ == "__main__":
    d_model, d_ff = 32, 512
    batch, seq = 2, 8

    key = jax.random.PRNGKey(0)
    kx, kp = jax.random.split(key)
    x = jax.random.normal(kx, (batch, seq, d_model), jnp.float32)
    w1, b1, w2, b2 = init_params(kp, d_model, d_ff)

    out = feed_forward(x, w1, b1, w2, b2)
    out = jax.block_until_ready(out)
    assert out.shape == (batch, seq, d_model)
    assert out.dtype == x.dtype

    # Reference with the same bf16-operand / f32-accumulate numerics (pure JAX).
    bf = jnp.bfloat16
    h_ref = jnp.maximum(
        jnp.dot(x.astype(bf), w1.astype(bf),
                preferred_element_type=jnp.float32) + b1, 0.0)
    ref = jnp.dot(h_ref.astype(bf), w2.astype(bf),
                  preferred_element_type=jnp.float32) + b2
    assert jnp.allclose(out, ref, atol=1e-2, rtol=1e-2), (
        float(jnp.max(jnp.abs(out - ref))))

    print("KERNEL_OK")
</pallas_src>

<mosaic_0001>
module attributes {stable_mosaic.version = 11 : i64} {
  func.func @_ffn_kernel(%arg0: i32, %arg1: i32, %arg2: memref<16x32xbf16, #tpu.memory_space<vmem>>, %arg3: memref<32x512xbf16, #tpu.memory_space<vmem>>, %arg4: memref<1x512xf32, #tpu.memory_space<vmem>>, %arg5: memref<512x32xbf16, #tpu.memory_space<vmem>>, %arg6: memref<1x32xf32, #tpu.memory_space<vmem>>, %arg7: memref<16x32xf32, #tpu.memory_space<vmem>>, %arg8: memref<16x32xf32, #tpu.memory_space<vmem>>) attributes {dimension_semantics = [#tpu.dimension_semantics<parallel>, #tpu.dimension_semantics<arbitrary>], iteration_bounds = array<i64: 1, 1>, scalar_prefetch = 0 : i64, scratch_operands = 1 : i64, tpu.core_type = #tpu.core_type<tc>, window_params = [{transform_indices = @transform_0, window_bounds = array<i64: 16, 32>}, {transform_indices = @transform_1, window_bounds = array<i64: 32, 512>}, {transform_indices = @transform_2, window_bounds = array<i64: 1, 512>}, {transform_indices = @transform_3, window_bounds = array<i64: 512, 32>}, {pipeline_mode = #tpu.pipeline_mode<synchronous>, transform_indices = @transform_4, window_bounds = array<i64: 1, 32>}, {transform_indices = @transform_5, window_bounds = array<i64: 16, 32>}]} {
    %c0_i32 = arith.constant 0 : i32
    %0 = arith.cmpi eq, %arg1, %c0_i32 : i32
    %1 = arith.extui %0 : i1 to i32
    %c0_i32_0 = arith.constant 0 : i32
    %2 = arith.cmpi ne, %1, %c0_i32_0 : i32
    scf.if %2 {
      %cst_16 = arith.constant 0.000000e+00 : f32
      %20 = vector.broadcast %cst_16 : f32 to vector<16x32xf32>
      %c0_17 = arith.constant 0 : index
      %c0_18 = arith.constant 0 : index
      %21 = vector.load %arg8[%c0_17, %c0_18] : memref<16x32xf32, #tpu.memory_space<vmem>>, vector<16x32xf32>
      tpu.vector_store %arg8[%c0_17, %c0_18], %20 {strides = array<i32>} : memref<16x32xf32, #tpu.memory_space<vmem>>, vector<16x32xf32>,
    } else {
    }
    %c0 = arith.constant 0 : index
    %c0_1 = arith.constant 0 : index
    %3 = vector.load %arg2[%c0, %c0_1] : memref<16x32xbf16, #tpu.memory_space<vmem>>, vector<16x32xbf16>
    %c0_2 = arith.constant 0 : index
    %c0_3 = arith.constant 0 : index
    %4 = vector.load %arg3[%c0_2, %c0_3] : memref<32x512xbf16, #tpu.memory_space<vmem>>, vector<32x512xbf16>
    %cst = arith.constant dense<0.000000e+00> : vector<16x512xf32>
    %5 = tpu.matmul %3, %4, %cst {dimension_numbers = #tpu.dot_dimension_numbers<[1], [0], [0], [1], [0, 0, 1, 1], [], []>} : vector<16x32xbf16>, vector<32x512xbf16>, vector<16x512xf32> -> vector<16x512xf32>
    %c0_4 = arith.constant 0 : index
    %c0_5 = arith.constant 0 : index
    %6 = vector.load %arg4[%c0_4, %c0_5] : memref<1x512xf32, #tpu.memory_space<vmem>>, vector<1x512xf32>
    %7 = vector.broadcast %6 : vector<1x512xf32> to vector<16x512xf32>
    %8 = arith.addf %5, %7 : vector<16x512xf32>
    %cst_6 = arith.constant 0.000000e+00 : f32
    %9 = vector.broadcast %cst_6 : f32 to vector<16x512xf32>
    %10 = arith.maximumf %8, %9 : vector<16x512xf32>
    %c0_7 = arith.constant 0 : index
    %c0_8 = arith.constant 0 : index
    %11 = vector.load %arg8[%c0_7, %c0_8] : memref<16x32xf32, #tpu.memory_space<vmem>>, vector<16x32xf32>
    %12 = arith.truncf %10 : vector<16x512xf32> to vector<16x512xbf16>
    %c0_9 = arith.constant 0 : index
    %c0_10 = arith.constant 0 : index
    %13 = vector.load %arg5[%c0_9, %c0_10] : memref<512x32xbf16, #tpu.memory_space<vmem>>, vector<512x32xbf16>
    %cst_11 = arith.constant dense<0.000000e+00> : vector<16x32xf32>
    %14 = tpu.matmul %12, %13, %cst_11 {dimension_numbers = #tpu.dot_dimension_numbers<[1], [0], [0], [1], [0, 0, 1, 1], [], []>} : vector<16x512xbf16>, vector<512x32xbf16>, vector<16x32xf32> -> vector<16x32xf32>
    %15 = arith.addf %11, %14 : vector<16x32xf32>
    %c0_12 = arith.constant 0 : index
    %c0_13 = arith.constant 0 : index
    %16 = vector.load %arg8[%c0_12, %c0_13] : memref<16x32xf32, #tpu.memory_space<vmem>>, vector<16x32xf32>
    tpu.vector_store %arg8[%c0_12, %c0_13], %15 {strides = array<i32>} : memref<16x32xf32, #tpu.memory_space<vmem>>, vector<16x32xf32>,
    %c0_i32_14 = arith.constant 0 : i32
    %17 = arith.cmpi eq, %arg1, %c0_i32_14 : i32
    %18 = arith.extui %17 : i1 to i32
    %c0_i32_15 = arith.constant 0 : i32
    %19 = arith.cmpi ne, %18, %c0_i32_15 : i32
    scf.if %19 {
      %c0_16 = arith.constant 0 : index
      %c0_17 = arith.constant 0 : index
      %20 = vector.load %arg8[%c0_16, %c0_17] : memref<16x32xf32, #tpu.memory_space<vmem>>, vector<16x32xf32>
      %c0_18 = arith.constant 0 : index
      %c0_19 = arith.constant 0 : index
      %21 = vector.load %arg6[%c0_18, %c0_19] : memref<1x32xf32, #tpu.memory_space<vmem>>, vector<1x32xf32>
      %22 = vector.broadcast %21 : vector<1x32xf32> to vector<16x32xf32>
      %23 = arith.addf %20, %22 : vector<16x32xf32>
      %c0_20 = arith.constant 0 : index
      %c0_21 = arith.constant 0 : index
      %24 = vector.load %arg7[%c0_20, %c0_21] : memref<16x32xf32, #tpu.memory_space<vmem>>, vector<16x32xf32>
      tpu.vector_store %arg7[%c0_20, %c0_21], %23 {strides = array<i32>} : memref<16x32xf32, #tpu.memory_space<vmem>>, vector<16x32xf32>,
    } else {
    }
    return
  }
  func.func @transform_0(%arg0: i32, %arg1: i32) -> (i32, i32) {
    %c0_i32 = arith.constant 0 : i32
    %c0_i32_0 = arith.constant 0 : i32
    return %arg0, %c0_i32 : i32, i32
  }
  func.func @transform_1(%arg0: i32, %arg1: i32) -> (i32, i32) {
    %c0_i32 = arith.constant 0 : i32
    %c0_i32_0 = arith.constant 0 : i32
    return %c0_i32, %arg1 : i32, i32
  }
  func.func @transform_2(%arg0: i32, %arg1: i32) -> (i32, i32) {
    %c0_i32 = arith.constant 0 : i32
    %c0_i32_0 = arith.constant 0 : i32
    return %c0_i32, %arg1 : i32, i32
  }
  func.func @transform_3(%arg0: i32, %arg1: i32) -> (i32, i32) {
    %c0_i32 = arith.constant 0 : i32
    %c0_i32_0 = arith.constant 0 : i32
    return %arg1, %c0_i32 : i32, i32
  }
  func.func @transform_4(%arg0: i32, %arg1: i32) -> (i32, i32) {
    %c0_i32 = arith.constant 0 : i32
    %c0_i32_0 = arith.constant 0 : i32
    %c0_i32_1 = arith.constant 0 : i32
    return %c0_i32, %c0_i32_0 : i32, i32
  }
  func.func @transform_5(%arg0: i32, %arg1: i32) -> (i32, i32) {
    %c0_i32 = arith.constant 0 : i32
    %c0_i32_0 = arith.constant 0 : i32
    return %arg0, %c0_i32 : i32, i32
  }
}

</mosaic_0001>

<bundles_post_ra>
// kernel: tpu_custom_call.1
= control target key start
LH: loop header
LB: loop body
LE: loop exit
PB: predicated region body
PF: predicated region fallthrough
CT: control target
= control target key end

     0   :  { %vm26_vm0 = vcmask 261120   ;;  %s955_s0 = inlined_call_operand.vmem [shape: bf16[16,32], index: 0, kind: input, shape index: {}]   ;;  %s956_s1 = inlined_call_operand.vmem [shape: bf16[32,512], index: 1, kind: input, shape index: {}]   ;;  %s957_s2 = inlined_call_operand.vmem [shape: f32[1,512], index: 2, kind: input, shape index: {}]   ;;  %s958_s3 = inlined_call_operand.vmem [shape: bf16[512,32], index: 3, kind: input, shape index: {}]   ;;  %s959_s4 = inlined_call_operand.vmem [shape: f32[1,32], index: 4, kind: input, shape index: {}]   ;;  %s960_s5 = inlined_call_operand.hbm [shape: f32[16,32], index: 5, kind: output, shape index: {}]  }
   0x1   :  { %v537_v0 = vld [vmem:[%s956_s1 + $0x20] sm:$0xf]  ;;  %v690_v1 = vld [vmem:[%s956_s1 + $0x2c] sm:$0xf0]  ;;  %v688_v2 = vld [vmem:[%s956_s1 + $0x24] sm:$0xf] }
   0x2   :  { %v538_v3 = vor.u32 %v690_v1, %v537_v0  ;;  %v539_v4 = vld [vmem:[%s956_s1 + $0x30] sm:$0xf0]  ;;  %v545_v5 = vld [vmem:[%s956_s1 + $0x28] sm:$0xf]  ;;  %v691_v6 = vld [vmem:[%s956_s1 + $0x34] sm:$0xf0] }
   0x3   :  { %v542_v7 = vor.u32 %v688_v2, %v539_v4  ;;  %v546_v8 = vor.u32 %v691_v6, %v545_v5  ;;  %v689_v9 = vld [vmem:[%s956_s1 + $0x2c] sm:$0xf]  ;;  %v547_v10 = vld [vmem:[%s956_s1 + $0x38] sm:$0xf0]  ;;  %v521_v11 = vld [vmem:[%s956_s1] sm:$0xf] }
   0x4   :  { %104 = vmatpush.bf16.msra.mxu0 %v538_v3  ;;  %v550_v12 = vor.u32 %v689_v9, %v547_v10  ;;  %v686_v13 = vld [vmem:[%s956_s1 + $0xc] sm:$0xf0]  ;;  %v684_v14 = vld [vmem:[%s956_s1 + $0x4] sm:$0xf]  ;;  %v523_v15 = vld [vmem:[%s956_s1 + $0x10] sm:$0xf0] }
   0x5   :  { %118 = vmatpush.bf16.msra.mxu1 %v542_v7  ;;  %132 = vmatpush.bf16.msra.mxu2 %v546_v8  ;;  %v522_v16 = vor.u32 %v686_v13, %v521_v11  ;;  %v526_v17 = vor.u32 %v684_v14, %v523_v15  ;;  %v529_v18 = vld [vmem:[%s956_s1 + $0x8] sm:$0xf]  ;;  %v687_v19 = vld [vmem:[%s956_s1 + $0x14] sm:$0xf0]  ;;  %v685_v20 = vld [vmem:[%s956_s1 + $0xc] sm:$0xf] }
   0x6   :  { %146 = vmatpush.bf16.msra.mxu3 %v550_v12  ;;  %v530_v21 = vor.u32 %v687_v19, %v529_v18  ;;  %v531_v22 = vld [vmem:[%s956_s1 + $0x18] sm:$0xf0]  ;;  %v683_v25 = vld [vmem:[%s955_s0] sm:$0xff]  ;;  %v698_v28 = vld [vmem:[%s958_s3 + $0x30] sm:$0xff] }
   0x7   :  { %v699_v23 = vld [vmem:[%s958_s3 + $0x38] sm:$0xff]  ;;  %v534_v24 = vor.u32 %v685_v20, %v531_v22  ;;  %v706_v30 = vld [vmem:[%s958_s3 + $0x70] sm:$0xff] }
   0x8   :  { %v707_v26 = vld [vmem:[%s958_s3 + $0x78] sm:$0xff]  ;;  %105 = vmatpush.bf16.msra.mxu0 %v522_v16 }
   0x9   :  { %119 = vmatpush.bf16.msra.mxu1 %v526_v17  ;;  %133 = vmatpush.bf16.msra.mxu2 %v530_v21  ;;  %v715_v27 = vld [vmem:[%s958_s3 + $0xb8] sm:$0xff] }
   0xa   :  { %147 = vmatpush.bf16.msra.mxu3 %v534_v24  ;;  %v723_v29 = vld [vmem:[%s958_s3 + $0xf8] sm:$0xff] }
   0xb   :  { %551 = vmatmul.msk.bf16.vlgmr.msra.gmra.mxu0 %vm26_vm0, %v683_v25 }
   0xc   :  { %424 = vmatpush.bf16.msrb.mxu0 %v699_v23 }
   0xd   :  { %438 = vmatpush.bf16.msrb.mxu1 %v707_v26 }
   0xe   :  { %10 = vsyncpa [#allocation4], 0  ;;  %552 = vmatmul.msk.bf16.vlgmr.msra.gmra.mxu1 %vm26_vm0, %v683_v25  ;;  %553 = vmatmul.msk.bf16.vlgmr.msra.gmra.mxu2 %vm26_vm0, %v683_v25  ;;  %v714_v31 = vld [vmem:[%s958_s3 + $0xb0] sm:$0xff]  ;;  %v697_v32 = vld [vmem:[%s958_s3 + $0x28] sm:$0xff]  ;;  %v755_v26 = vmov 0.0   ;;  %s756_s12 = smov [#allocation3]  }
   0xf   :  { %554 = vmatmul.msk.bf16.vlgmr.msra.gmra.mxu3 %vm26_vm0, %v683_v25  ;;  %452 = vmatpush.bf16.msrb.mxu2 %v715_v27  ;;  %v722_v33 = vld [vmem:[%s958_s3 + $0xf0] sm:$0xff]  ;;  %v705_v34 = vld [vmem:[%s958_s3 + $0x68] sm:$0xff]  ;;  %v696_v36 = vld [vmem:[%s958_s3 + $0x20] sm:$0xff]  ;;  %27 = vst.msk [vmem:[#allocation2] sm:$0xff] %vm26_vm0, %v755_v26  ;;  %s501_s13 = sshll.u32 %s756_s12, 4  ;;  %s503_s16 = sshll.u32 %s960_s5, 4  ;;  %s502_s13 = int_to_ptr.vmem [resolvable:$true] %s501_s13  ;;  %s504_s16 = int_to_ptr.hbm [resolvable:$true] %s503_s16 }
  0x10   :  { %425 = vmatpush.bf16.msrb.mxu0 %v698_v28  ;;  %466 = vmatpush.bf16.msrb.mxu3 %v723_v29  ;;  %v713_v35 = vld [vmem:[%s958_s3 + $0xa8] sm:$0xff]  ;;  %v704_v38 = vld [vmem:[%s958_s3 + $0x60] sm:$0xff]  ;;  %v695_v39 = vld [vmem:[%s958_s3 + $0x18] sm:$0xff]  ;;  %28 = vst.msk [vmem:[#allocation2 + $0x8] sm:$0xff] %vm26_vm0, %v755_v26  ;;  %s758_s17 = smov 8  }
  0x11   :  { %439 = vmatpush.bf16.msrb.mxu1 %v706_v30  ;;  %v721_v37 = vld [vmem:[%s958_s3 + $0xe8] sm:$0xff]  ;;  %v703_v40 = vld [vmem:[%s958_s3 + $0x58] sm:$0xff]  ;;  %v712_v41 = vld [vmem:[%s958_s3 + $0xa0] sm:$0xff] }
  0x12   :  { %v720_v42 = vld [vmem:[%s958_s3 + $0xe0] sm:$0xff]  ;;  %v694_v43 = vld [vmem:[%s958_s3 + $0x10] sm:$0xff]  ;;  %v711_v45 = vld [vmem:[%s958_s3 + $0x98] sm:$0xff] }
  0x13   :  { %453 = vmatpush.bf16.msrb.mxu2 %v714_v31  ;;  %v702_v44 = vld [vmem:[%s958_s3 + $0x50] sm:$0xff]  ;;  %v719_v46 = vld [vmem:[%s958_s3 + $0xd8] sm:$0xff]  ;;  %v693_v47 = vld [vmem:[%s958_s3 + $0x8] sm:$0xff] }
  0x14   :  { %426 = vmatpush.bf16.msrb.mxu0 %v697_v32  ;;  %467 = vmatpush.bf16.msrb.mxu3 %v722_v33  ;;  %v701_v48 = vld [vmem:[%s958_s3 + $0x48] sm:$0xff]  ;;  %v710_v49 = vld [vmem:[%s958_s3 + $0x90] sm:$0xff]  ;;  %v692_v51 = vld [vmem:[%s958_s3] sm:$0xff] }
  0x15   :  { %440 = vmatpush.bf16.msrb.mxu1 %v705_v34  ;;  %v718_v50 = vld [vmem:[%s958_s3 + $0xd0] sm:$0xff]  ;;  %v700_v52 = vld [vmem:[%s958_s3 + $0x40] sm:$0xff]  ;;  %v709_v53 = vld [vmem:[%s958_s3 + $0x88] sm:$0xff] }
  0x16   :  { %v717_v54 = vld [vmem:[%s958_s3 + $0xc8] sm:$0xff]  ;;  %v708_v55 = vld [vmem:[%s958_s3 + $0x80] sm:$0xff] }
  0x17   :  { %454 = vmatpush.bf16.msrb.mxu2 %v713_v35  ;;  %v716_v56 = vld [vmem:[%s958_s3 + $0xc0] sm:$0xff] }
  0x18   :  { %427 = vmatpush.bf16.msrb.mxu0 %v696_v36  ;;  %468 = vmatpush.bf16.msrb.mxu3 %v721_v37  ;;  %v39_v57 = vld [vmem:[%s957_s2] sm:$0xf] }
  0x19   :  { %441 = vmatpush.bf16.msrb.mxu1 %v704_v38  ;;  %v41_v59 = vperm.slane %v39_v57, 0  ;;  %v42_v61 = vperm.slane %v39_v57, 1  ;;  %v43_v7 = vperm.slane %v39_v57, 2  ;;  %v44_v9 = vperm.slane %v39_v57, 3  ;;  %v162_v33 = vld [vmem:[#allocation2] sm:$0xff] }
  0x1b   :  { %455 = vmatpush.bf16.msrb.mxu2 %v712_v41  ;;  %v163_v41 = vld [vmem:[#allocation2 + $0x8] sm:$0xff] }
  0x1c   :  { %428 = vmatpush.bf16.msrb.mxu0 %v695_v39  ;;  %469 = vmatpush.bf16.msrb.mxu3 %v720_v42 }
  0x1d   :  { %442 = vmatpush.bf16.msrb.mxu1 %v703_v40 }
  0x1f   :  { %456 = vmatpush.bf16.msrb.mxu2 %v711_v45 }
  0x20   :  { %429 = vmatpush.bf16.msrb.mxu0 %v694_v43  ;;  %470 = vmatpush.bf16.msrb.mxu3 %v719_v46 }
  0x21   :  { %443 = vmatpush.bf16.msrb.mxu1 %v702_v44  ;;  %v728_v44 = vld [vmem:[%s959_s4] ss:$0 sm:$0xff]  ;;  %s757_s4 = smov 128  }
  0x23   :  { %457 = vmatpush.bf16.msrb.mxu2 %v710_v49 }
  0x24   :  { %430 = vmatpush.bf16.msrb.mxu0 %v693_v47  ;;  %471 = vmatpush.bf16.msrb.mxu3 %v718_v50 }
  0x25   :  { %444 = vmatpush.bf16.msrb.mxu1 %v701_v48 }
  0x27   :  { %458 = vmatpush.bf16.msrb.mxu2 %v709_v53 }
  0x28   :  { %431 = vmatpush.bf16.msrb.mxu0 %v692_v51  ;;  %472 = vmatpush.bf16.msrb.mxu3 %v717_v54 }
  0x29   :  { %445 = vmatpush.bf16.msrb.mxu1 %v700_v52 }
  0x2b   :  { %459 = vmatpush.bf16.msrb.mxu2 %v708_v55 }
  0x2c   :  { %473 = vmatpush.bf16.msrb.mxu3 %v716_v56 }
  0x88   :  { %v107_v58 = vpop.f32.mrf.mxu0 }
  0x89   :  { %v108_v62 = vadd.f32 %v107_v58, %v41_v59 }
  0x8b   :  { %v121_v60 = vpop.f32.mrf.mxu1  ;;  %v154_v3 = vmax.f32 %v108_v62, 0.0 }
  0x8c   :  { %v122_v63 = vadd.f32 %v121_v60, %v42_v61 }
  0x8e   :  { %v155_v6 = vmax.f32 %v122_v63, 0.0 }
  0x90   :  { %v109_v2 = vpop.f32.mrf.mxu0 }
  0x91   :  { %v135_v0 = vpop.f32.mrf.mxu2  ;;  %v110_v4 = vadd.f32 %v109_v2, %v41_v59 }
  0x92   :  { %v149_v1 = vpop.f32.mrf.mxu3  ;;  %v136_v13 = vadd.f32 %v135_v0, %v43_v7 }
  0x93   :  { %v123_v5 = vpop.f32.mrf.mxu1  ;;  %v158_v10 = vmax.f32 %v110_v4, 0.0  ;;  %v150_v15 = vadd.f32 %v149_v1, %v44_v9 }
  0x94   :  { %v124_v8 = vadd.f32 %v123_v5, %v42_v61  ;;  %v156_v20 = vmax.f32 %v136_v13, 0.0 }
  0x95   :  { %v164_v12 = vpack.c.bf16 %v158_v10, %v154_v3  ;;  %v157_v22 = vmax.f32 %v150_v15, 0.0 }
  0x96   :  { %v159_v11 = vmax.f32 %v124_v8, 0.0 }
  0x97   :  { %432 = vmatmul.bf16.vlgmr.msrb.gmra.mxu0 %v164_v12 }
  0x98   :  { %v165_v14 = vpack.c.bf16 %v159_v11, %v155_v6 }
  0x99   :  { %v137_v16 = vpop.f32.mrf.mxu2 }
  0x9a   :  { %v138_v17 = vadd.f32 %v137_v16, %v43_v7  ;;  %v151_v18 = vpop.f32.mrf.mxu3  ;;  %446 = vmatmul.bf16.vlgmr.msrb.gmra.mxu1 %v165_v14 }
  0x9b   :  { %v152_v19 = vadd.f32 %v151_v18, %v44_v9 }
  0x9c   :  { %v160_v21 = vmax.f32 %v138_v17, 0.0 }
  0x9d   :  { %v161_v23 = vmax.f32 %v152_v19, 0.0 }
  0x9e   :  { %v166_v24 = vpack.c.bf16 %v160_v21, %v156_v20 }
  0x9f   :  { %v167_v25 = vpack.c.bf16 %v161_v23, %v157_v22 }
  0xa0   :  { %460 = vmatmul.bf16.vlgmr.msrb.gmra.mxu2 %v166_v24 }
  0xa1   :  { %474 = vmatmul.bf16.vlgmr.msrb.gmra.mxu3 %v167_v25 }
 0x114   :  { %v433_v27 = vpop.f32.mrf.mxu0 }
 0x117   :  { %v447_v28 = vpop.f32.mrf.mxu1 }
 0x118   :  { %v448_v29 = vadd.f32 %v447_v28, %v433_v27 }
 0x11c   :  { %v435_v35 = vpop.f32.mrf.mxu0 }
 0x11f   :  { %v449_v36 = vpop.f32.mrf.mxu1 }
 0x120   :  { %v450_v38 = vadd.f32 %v449_v36, %v435_v35 }
 0x123   :  { %v461_v30 = vpop.f32.mrf.mxu2 }
 0x124   :  { %v462_v31 = vadd.f32 %v461_v30, %v448_v29  ;;  %v475_v32 = vpop.f32.mrf.mxu3 }
 0x126   :  { %v476_v34 = vadd.f32 %v475_v32, %v462_v31 }
 0x128   :  { %v480_v37 = vadd.f32 %v476_v34, %v162_v33 }
 0x12a   :  { %482 = vst.msk [vmem:[#allocation2] sm:$0xff] %vm26_vm0, %v480_v37 }
 0x12b   :  { %v463_v39 = vpop.f32.mrf.mxu2 }
 0x12c   :  { %v464_v40 = vadd.f32 %v463_v39, %v450_v38  ;;  %v477_v42 = vpop.f32.mrf.mxu3 }
 0x12e   :  { %v478_v43 = vadd.f32 %v477_v42, %v464_v40 }
 0x130   :  { %v481_v45 = vadd.f32 %v478_v43, %v163_v41 }
 0x131   :  { %v487_v46 = vld [vmem:[#allocation2] sm:$0xff] }
 0x132   :  { %483 = vst.msk [vmem:[#allocation2 + $0x8] sm:$0xff] %vm26_vm0, %v481_v45  ;;  %v493_v47 = vadd.f32 %v728_v44, %v487_v46 }
 0x134   :  { %495 = vst.msk [vmem:[#allocation3] sm:$0xff] %vm26_vm0, %v493_v47 }
 0x139   :  { %v488_v48 = vld [vmem:[#allocation2 + $0x8] sm:$0xff] }
 0x13a   :  { %v494_v49 = vadd.f32 %v728_v44, %v488_v48 }
 0x13c   :  { %496 = vst.msk [vmem:[#allocation3 + $0x8] sm:$0xff] %vm26_vm0, %v494_v49 }
 0x13d   :  { %509 = dma.vmem_to_hbm [thread:$0]  %s502_s13, 256, %s504_s16, [#allocation4], %s757_s4, %s757_s4, %s758_s17  }
 0x13e   :  { %753 = dma.done.wait [#allocation4], 256  }
 0x13f   :  { %754 = vsyncadd [#allocation4], 4294967040 }
 0x140   :  { %514 = vsyncpa [#allocation4], 1 }

</bundles_post_ra>
